<compile_context>
chip_gen: v7x
topology: tpu7x:2x2x1
jax: 0.10.0
libtpu: 0.0.40
codegen_flags: <defaults>
</compile_context>

<pallas_src>
import jax
import jax.numpy as jnp
from jax.experimental import pallas as pl
from jax.experimental.pallas import tpu as pltpu

_LANE = 128


def _make_boxes_kernel(n_valid, inv_l1, inv_giou):
    """Build the kernel with shape-derived constants baked in as closures."""

    def kernel(comb_ref, res_ref):
        # comb_ref: (8, P) component-major, lane-dense (P multiple of 128).
        # Rows 0-3 = output cxcywh, rows 4-7 = target cxcywh.
        x = comb_ref[...].astype(jnp.float32)          # (8, P)
        o = x[0:4]                                     # (4, P) output cx,cy,w,h
        t = x[4:8]                                     # (4, P) target cx,cy,w,h

        # ---- loss_bbox: F.l1_loss(outputs, targets, reduction='mean') ----
        # One dense (4,P) sub+abs, then lane reduce + sublane reduce (XLU slots).
        # Padded lanes hold identical boxes for outputs/targets -> contribute 0.
        d = jnp.abs(o - t)                                             # (4, P)
        l1 = jnp.sum(jnp.sum(d, axis=1, keepdims=True),
                     axis=0, keepdims=True) * inv_l1                   # (1, 1)

        # ---- loss_giou: mean_b( sum_n(1 - diag GIoU) / 16 ) = sum / (16*B) ----
        # box_cxcywh_to_xyxy on (2,P) slabs; half-extents hoisted (no f32 FMA on
        # v5e/v6e VPU, so each duplicate 0.5*wh would cost an extra vmul).
        o_xy, o_hw = o[0:2], 0.5 * o[2:4]              # (2, P)
        t_xy, t_hw = t[0:2], 0.5 * t[2:4]
        o_min, o_max = o_xy - o_hw, o_xy + o_hw        # (2, P) corners (x1y1 / x2y2)
        t_min, t_max = t_xy - t_hw, t_xy + t_hw

        # Areas straight from the w,h rows.
        area_o = o[2:3] * o[3:4]                       # (1, P)
        area_t = t[2:3] * t[3:4]                       # (1, P)

        # Intersection / enclosure via (2,P) min/max on the stacked corner slabs.
        inter_wh = jnp.maximum(jnp.minimum(o_max, t_max)
                               - jnp.maximum(o_min, t_min), 0.0)       # (2, P)
        inter = inter_wh[0:1] * inter_wh[1:2]                          # (1, P)

        encl_wh = jnp.maximum(o_max, t_max) - jnp.minimum(o_min, t_min)  # (2, P)
        encl = encl_wh[0:1] * encl_wh[1:2]                               # (1, P)

        union = area_o + area_t - inter
        # NOTE: like the PyTorch reference, no epsilon on union/encl (degenerate
        # boxes would produce Inf/NaN there too). Exact divides: the kernel is
        # launch-bound, so this is free and matches the reference more tightly
        # than pl.reciprocal(approx=True).
        iou = inter / union
        giou = iou - (encl - union) / encl                             # (1, P)

        # Mask off padded lanes (exact zero contribution regardless of pad numerics).
        lane = jax.lax.broadcasted_iota(jnp.int32, giou.shape, 1)
        contrib = jnp.where(lane < n_valid, 1.0 - giou, 0.0)
        gl = jnp.sum(contrib, axis=1, keepdims=True) * inv_giou        # (1, 1)

        # Single (1, 2) store (one writeback) instead of two masked partial stores:
        # lane 0 <- l1, lane 1 <- gl via an iota select (broadcasts the scalars).
        col = jax.lax.broadcasted_iota(jnp.int32, (1, 2), 1)
        res_ref[...] = jnp.where(col == 0, l1, gl)

    return kernel


@jax.jit
def _boxes_losses(outputs, targets):
    # outputs, targets: (B, N, 4) cxcywh
    B, N, _ = outputs.shape
    n = B * N
    P = max(_LANE, ((n + _LANE - 1) // _LANE) * _LANE)

    # Build the lane-dense (8, P) component-major slab as concat of transposed
    # halves, padding along the LANE axis afterwards -> one XLA prep fusion
    # (no standalone transpose/copy of a row-padded intermediate).
    comb = jnp.concatenate(
        [outputs.reshape(n, 4).T, targets.reshape(n, 4).T], axis=0)     # (8, n)
    if P > n:
        # Pad with identical benign boxes (cx=cy=w=h=0.5): padded L1 terms are 0
        # and union/enclosure stay non-degenerate (no 1/0 on pad lanes).
        comb = jnp.pad(comb, ((0, 0), (0, P - n)), constant_values=0.5)

    kernel = _make_boxes_kernel(n, 1.0 / (4.0 * n), 1.0 / (16.0 * B))
    res = pl.pallas_call(
        kernel,
        out_shape=jax.ShapeDtypeStruct((1, 2), jnp.float32),
        # No grid: whole (8, P) slab lives in VMEM (tiny), avoids the 1-point-grid
        # pipeline prologue/epilogue. Explicit memory spaces document the layout.
        in_specs=[pl.BlockSpec(memory_space=pltpu.MemorySpace.VMEM)],
        out_specs=pl.BlockSpec(memory_space=pltpu.MemorySpace.VMEM),
    )(comb)
    return res[0, 0], res[0, 1]


class SetCriterion:
    """JAX/Pallas reimplementation of the PyTorch SetCriterion forward pass."""

    def __init__(self, losses=("boxes",), matcher=None, device=None):
        self.losses = tuple(losses)
        self.matcher = matcher      # unused by forward (matches reference behavior)
        self.device = device        # unused
        self.w = 720
        self.h = 576

    def __call__(self, outputs, targets):
        losses = {}
        for loss in self.losses:
            assert loss == "boxes", f"do you really want to compute {loss} loss?"
            bbox, giou = _boxes_losses(outputs, targets)
            losses["loss_bbox"] = bbox
            losses["loss_giou"] = giou
        return losses


# ---------------- pure-JAX reference (for sanity check only) ----------------
def _reference(outputs, targets):
    def to_xyxy(b):
        cx, cy, w, h = b[..., 0], b[..., 1], b[..., 2], b[..., 3]
        return jnp.stack([cx - 0.5 * w, cy - 0.5 * h, cx + 0.5 * w, cy + 0.5 * h], -1)

    l1 = jnp.mean(jnp.abs(outputs - targets))
    o, t = to_xyxy(outputs), to_xyxy(targets)
    area_o = (o[..., 2] - o[..., 0]) * (o[..., 3] - o[..., 1])
    area_t = (t[..., 2] - t[..., 0]) * (t[..., 3] - t[..., 1])
    iw = jnp.clip(jnp.minimum(o[..., 2], t[..., 2]) - jnp.maximum(o[..., 0], t[..., 0]), 0)
    ih = jnp.clip(jnp.minimum(o[..., 3], t[..., 3]) - jnp.maximum(o[..., 1], t[..., 1]), 0)
    inter = iw * ih
    union = area_o + area_t - inter
    iou = inter / union
    ew = jnp.clip(jnp.maximum(o[..., 2], t[..., 2]) - jnp.minimum(o[..., 0], t[..., 0]), 0)
    eh = jnp.clip(jnp.maximum(o[..., 3], t[..., 3]) - jnp.minimum(o[..., 1], t[..., 1]), 0)
    encl = ew * eh
    giou = iou - (encl - union) / encl
    giou_loss = jnp.mean(jnp.sum(1.0 - giou, axis=-1) / 16.0)
    return {"loss_bbox": l1, "loss_giou": giou_loss}


if __name__ == "__main__":
    B, N = 2, 16
    key = jax.random.PRNGKey(0)
    k1, k2, k3, k4 = jax.random.split(key, 4)
    # deterministic synthetic boxes in cxcywh (positive widths/heights)
    out_boxes = jnp.concatenate(
        [jax.random.uniform(k1, (B, N, 2), minval=0.2, maxval=0.8),
         jax.random.uniform(k2, (B, N, 2), minval=0.1, maxval=0.3)], axis=-1)
    tgt_boxes = jnp.concatenate(
        [jax.random.uniform(k3, (B, N, 2), minval=0.2, maxval=0.8),
         jax.random.uniform(k4, (B, N, 2), minval=0.1, maxval=0.3)], axis=-1)

    criterion = SetCriterion(losses=("boxes",), matcher=None, device=None)
    losses = criterion(out_boxes, tgt_boxes)
    jax.block_until_ready(losses)

    ref = _reference(out_boxes, tgt_boxes)
    # Exact divides in the kernel -> tight tolerance (only f32 reduction-order noise).
    assert jnp.allclose(losses["loss_bbox"], ref["loss_bbox"], atol=1e-5, rtol=1e-5)
    assert jnp.allclose(losses["loss_giou"], ref["loss_giou"], atol=1e-5, rtol=1e-5)

    print("KERNEL_OK")
</pallas_src>

<mosaic_0001>
module attributes {stable_mosaic.version = 11 : i64} {
  func.func @kernel(%arg0: memref<8x128xf32, #tpu.memory_space<vmem>>, %arg1: memref<1x2xf32, #tpu.memory_space<vmem>>) attributes {dimension_semantics = [], scalar_prefetch = 0 : i64, scratch_operands = 0 : i64, tpu.core_type = #tpu.core_type<tc>} {
    %c0 = arith.constant 0 : index
    %c0_0 = arith.constant 0 : index
    %0 = vector.load %arg0[%c0, %c0_0] : memref<8x128xf32, #tpu.memory_space<vmem>>, vector<8x128xf32>
    %1 = vector.extract_strided_slice %0 {offsets = [0, 0], sizes = [4, 128], strides = [1, 1]} : vector<8x128xf32> to vector<4x128xf32>
    %2 = vector.extract_strided_slice %0 {offsets = [4, 0], sizes = [4, 128], strides = [1, 1]} : vector<8x128xf32> to vector<4x128xf32>
    %3 = arith.subf %1, %2 : vector<4x128xf32>
    %4 = math.absf %3 : vector<4x128xf32>
    %cst = arith.constant dense<0.000000e+00> : vector<4xf32>
    %5 = vector.multi_reduction <add>, %4, %cst [1] : vector<4x128xf32> to vector<4xf32>
    %6 = vector.shape_cast %5 : vector<4xf32> to vector<4x1xf32>
    %cst_1 = arith.constant dense<0.000000e+00> : vector<1xf32>
    %7 = vector.multi_reduction <add>, %6, %cst_1 [0] : vector<4x1xf32> to vector<1xf32>
    %8 = vector.shape_cast %7 : vector<1xf32> to vector<1x1xf32>
    %cst_2 = arith.constant 7.812500e-03 : f32
    %9 = vector.broadcast %cst_2 : f32 to vector<1x1xf32>
    %10 = arith.mulf %8, %9 : vector<1x1xf32>
    %11 = vector.extract_strided_slice %1 {offsets = [0, 0], sizes = [2, 128], strides = [1, 1]} : vector<4x128xf32> to vector<2x128xf32>
    %12 = vector.extract_strided_slice %1 {offsets = [2, 0], sizes = [2, 128], strides = [1, 1]} : vector<4x128xf32> to vector<2x128xf32>
    %cst_3 = arith.constant 5.000000e-01 : f32
    %13 = vector.broadcast %cst_3 : f32 to vector<2x128xf32>
    %14 = arith.mulf %13, %12 : vector<2x128xf32>
    %15 = vector.extract_strided_slice %2 {offsets = [0, 0], sizes = [2, 128], strides = [1, 1]} : vector<4x128xf32> to vector<2x128xf32>
    %16 = vector.extract_strided_slice %2 {offsets = [2, 0], sizes = [2, 128], strides = [1, 1]} : vector<4x128xf32> to vector<2x128xf32>
    %cst_4 = arith.constant 5.000000e-01 : f32
    %17 = vector.broadcast %cst_4 : f32 to vector<2x128xf32>
    %18 = arith.mulf %17, %16 : vector<2x128xf32>
    %19 = arith.subf %11, %14 : vector<2x128xf32>
    %20 = arith.addf %11, %14 : vector<2x128xf32>
    %21 = arith.subf %15, %18 : vector<2x128xf32>
    %22 = arith.addf %15, %18 : vector<2x128xf32>
    %23 = vector.extract_strided_slice %1 {offsets = [2, 0], sizes = [1, 128], strides = [1, 1]} : vector<4x128xf32> to vector<1x128xf32>
    %24 = vector.extract_strided_slice %1 {offsets = [3, 0], sizes = [1, 128], strides = [1, 1]} : vector<4x128xf32> to vector<1x128xf32>
    %25 = arith.mulf %23, %24 : vector<1x128xf32>
    %26 = vector.extract_strided_slice %2 {offsets = [2, 0], sizes = [1, 128], strides = [1, 1]} : vector<4x128xf32> to vector<1x128xf32>
    %27 = vector.extract_strided_slice %2 {offsets = [3, 0], sizes = [1, 128], strides = [1, 1]} : vector<4x128xf32> to vector<1x128xf32>
    %28 = arith.mulf %26, %27 : vector<1x128xf32>
    %29 = arith.minimumf %20, %22 : vector<2x128xf32>
    %30 = arith.maximumf %19, %21 : vector<2x128xf32>
    %31 = arith.subf %29, %30 : vector<2x128xf32>
    %cst_5 = arith.constant 0.000000e+00 : f32
    %32 = vector.broadcast %cst_5 : f32 to vector<2x128xf32>
    %33 = arith.maximumf %31, %32 : vector<2x128xf32>
    %34 = vector.extract_strided_slice %33 {offsets = [0, 0], sizes = [1, 128], strides = [1, 1]} : vector<2x128xf32> to vector<1x128xf32>
    %35 = vector.extract_strided_slice %33 {offsets = [1, 0], sizes = [1, 128], strides = [1, 1]} : vector<2x128xf32> to vector<1x128xf32>
    %36 = arith.mulf %34, %35 : vector<1x128xf32>
    %37 = arith.maximumf %20, %22 : vector<2x128xf32>
    %38 = arith.minimumf %19, %21 : vector<2x128xf32>
    %39 = arith.subf %37, %38 : vector<2x128xf32>
    %40 = vector.extract_strided_slice %39 {offsets = [0, 0], sizes = [1, 128], strides = [1, 1]} : vector<2x128xf32> to vector<1x128xf32>
    %41 = vector.extract_strided_slice %39 {offsets = [1, 0], sizes = [1, 128], strides = [1, 1]} : vector<2x128xf32> to vector<1x128xf32>
    %42 = arith.mulf %40, %41 : vector<1x128xf32>
    %43 = arith.addf %25, %28 : vector<1x128xf32>
    %44 = arith.subf %43, %36 : vector<1x128xf32>
    %45 = arith.divf %36, %44 : vector<1x128xf32>
    %46 = arith.subf %42, %44 : vector<1x128xf32>
    %47 = arith.divf %46, %42 : vector<1x128xf32>
    %48 = arith.subf %45, %47 : vector<1x128xf32>
    %49 = tpu.iota {dimensions = array<i32: 1>} : vector<1x128xi32>
    %c32_i32 = arith.constant 32 : i32
    %50 = vector.broadcast %c32_i32 : i32 to vector<1x128xi32>
    %51 = arith.cmpi slt, %49, %50 : vector<1x128xi32>
    %cst_6 = arith.constant 1.000000e+00 : f32
    %52 = vector.broadcast %cst_6 : f32 to vector<1x128xf32>
    %53 = arith.subf %52, %48 : vector<1x128xf32>
    %cst_7 = arith.constant 0.000000e+00 : f32
    %54 = vector.broadcast %cst_7 : f32 to vector<1x128xf32>
    %55 = arith.select %51, %53, %54 : vector<1x128xi1>, vector<1x128xf32>
    %cst_8 = arith.constant dense<0.000000e+00> : vector<1xf32>
    %56 = vector.multi_reduction <add>, %55, %cst_8 [1] : vector<1x128xf32> to vector<1xf32>
    %57 = vector.shape_cast %56 : vector<1xf32> to vector<1x1xf32>
    %cst_9 = arith.constant 3.125000e-02 : f32
    %58 = vector.broadcast %cst_9 : f32 to vector<1x1xf32>
    %59 = arith.mulf %57, %58 : vector<1x1xf32>
    %60 = tpu.iota {dimensions = array<i32: 1>} : vector<1x2xi32>
    %c0_i32 = arith.constant 0 : i32
    %61 = vector.broadcast %c0_i32 : i32 to vector<1x2xi32>
    %62 = arith.cmpi eq, %60, %61 : vector<1x2xi32>
    %63 = vector.shape_cast %10 : vector<1x1xf32> to vector<1x1xf32>
    %64 = vector.broadcast %63 : vector<1x1xf32> to vector<1x2xf32>
    %65 = vector.shape_cast %59 : vector<1x1xf32> to vector<1x1xf32>
    %66 = vector.broadcast %65 : vector<1x1xf32> to vector<1x2xf32>
    %67 = arith.select %62, %64, %66 : vector<1x2xi1>, vector<1x2xf32>
    %c0_10 = arith.constant 0 : index
    %c0_11 = arith.constant 0 : index
    %68 = vector.load %arg1[%c0_10, %c0_11] : memref<1x2xf32, #tpu.memory_space<vmem>>, vector<1x2xf32>
    tpu.vector_store %arg1[%c0_10, %c0_11], %67 {strides = array<i32>} : memref<1x2xf32, #tpu.memory_space<vmem>>, vector<1x2xf32>,
    return
  }
}

</mosaic_0001>

<bundles_post_ra>
// kernel: _boxes_losses.1
= control target key start
LH: loop header
LB: loop body
LE: loop exit
PB: predicated region body
PF: predicated region fallthrough
CT: control target
= control target key end

     0   :  { %vm14_vm0 = vcmask 1043456   ;;  %v73_v31 = vlaneseq  ;;  %vm78_vm2 = vcmask 1040384   ;;  %vm85_vm4 = vcmask 8192   ;;  %s113_s0 = inlined_call_operand.vmem [shape: f32[8,128], index: 0, kind: input, shape index: {}]   ;;  %s114_s1 = inlined_call_operand.vmem [shape: f32[1,2], index: 1, kind: output, shape index: {}]  }
   0x1   :  { %v8_v0 = vld [vmem:[%s113_s0] sm:$0xff] }
   0x2   :  { %v10_v1 = vrot.slane %v8_v0, 4  ;;  %v26_v2 = vmul.f32 0.5, %v8_v0  ;;  %v32_v5 = vrot.slane %v8_v0, 1  ;;  %v74_v34 = vand.u32 127, %v73_v31 }
   0x4   :  { %v12_v3 = vsub.f32 %v8_v0, %v10_v1  ;;  %v28_v4 = vrot.slane %v26_v2, 2  ;;  %v34_v12 = vmul.f32 %v32_v5, %v8_v0  ;;  %vm75_vm1 = vcmp.lt.s32.totalorder %v74_v34, 32 }
   0x5   :  { %vm83_vm3 = vcmp.eq.s32.totalorder %v74_v34, 0 }
   0x6   :  { %v13_v6 = vand.u32 2147483647, %v12_v3  ;;  %v30_v7 = vsub.f32 %v8_v0, %v28_v4  ;;  %v31_v8 = vadd.f32 %v28_v4, %v8_v0  ;;  %v57_v21 = vrot.slane %v34_v12, 4 }
   0x8   :  { %v15_v9 = vsel %vm14_vm0, %v13_v6, 0.0  ;;  %v36_v10 = vrot.slane %v31_v8, 4  ;;  %v40_v11 = vrot.slane %v30_v7, 4  ;;  %v59_v25 = vadd.f32 %v57_v21, %v34_v12 }
   0x9   :  { %16 = vadd.xlane.f32.xlu0 %v15_v9 }
   0xa   :  { %v38_v13 = vmin.f32 %v31_v8, %v36_v10  ;;  %v42_v14 = vmax.f32 %v30_v7, %v40_v11  ;;  %v49_v15 = vmax.f32 %v31_v8, %v36_v10  ;;  %v50_v16 = vmin.f32 %v30_v7, %v40_v11 }
   0xc   :  { %v43_v17 = vsub.f32 %v38_v13, %v42_v14  ;;  %v51_v18 = vsub.f32 %v49_v15, %v50_v16 }
   0xe   :  { %v44_v19 = vmax.f32 %v43_v17, 0.0  ;;  %v53_v20 = vrot.slane %v51_v18, 1 }
  0x10   :  { %v46_v22 = vrot.slane %v44_v19, 1  ;;  %v55_v24 = vmul.f32 %v53_v20, %v51_v18 }
  0x12   :  { %v48_v23 = vmul.f32 %v46_v22, %v44_v19  ;;  %91 = vrcp.f32 %v55_v24 }
  0x14   :  { %v61_v26 = vrot.slane %v48_v23, 6 }
  0x16   :  { %v63_v27 = vsub.f32 %v59_v25, %v61_v26 }
  0x18   :  { %v65_v28 = vrot.slane %v63_v27, 2 }
  0x1a   :  { %93 = vrcp.f32 %v65_v28  ;;  %v69_v29 = vsub.f32 %v55_v24, %v65_v28 }
  0x1c   :  { %v92_v30 = vpop.eup %91 }
  0x1d   :  { %v71_v32 = vmul.f32 %v92_v30, %v69_v29 }
  0x24   :  { %v94_v33 = vpop.eup %93 }
  0x25   :  { %v68_v35 = vmul.f32 %v94_v33, %v48_v23 }
  0x27   :  { %v72_v36 = vsub.f32 %v68_v35, %v71_v32 }
  0x29   :  { %v76_v37 = vsub.f32 1.0, %v72_v36 }
  0x2b   :  { %v77_v38 = vsel %vm75_vm1, %v76_v37, 0.0 }
  0x2c   :  { %v79_v39 = vsel %vm78_vm2, %v77_v38, 0.0 }
  0x2d   :  { %80 = vadd.xlane.f32.xlu0 %v79_v39 }
  0x96   :  { %v17_v40 = vpop.xlane.xlu0 %16 }
  0x97   :  { %v18_v41 = vsel %vm14_vm0, %v17_v40, 0.0 }
  0x98   :  { %v19_v42 = vrot.slane %v18_v41, 4 }
  0x9a   :  { %v20_v43 = vadd.f32 %v19_v42, %v18_v41 }
  0x9c   :  { %v21_v44 = vrot.slane %v20_v43, 2 }
  0x9e   :  { %v22_v45 = vadd.f32 %v21_v44, %v20_v43 }
  0xa0   :  { %v23_v46 = vrot.slane %v22_v45, 1 }
  0xa2   :  { %v24_v47 = vadd.f32 %v23_v46, %v22_v45 }
  0xa4   :  { %v25_v49 = vmul.f32 0.0078125, %v24_v47 }
  0xba   :  { %v81_v48 = vpop.xlane.xlu0 %80 }
  0xbb   :  { %v82_v50 = vmul.f32 0.03125, %v81_v48 }
  0xbd   :  { %v84_v51 = vsel %vm83_vm3, %v25_v49, %v82_v50 }
  0xbe   :  { %86 = vst.msk [vmem:[%s114_s1] sm:$0x1] %vm85_vm4, %v84_v51 }

</bundles_post_ra>
